<compile_context>
chip_gen: v7x
topology: tpu7x:2x2x1
jax: 0.10.0
libtpu: 0.0.40
codegen_flags: <defaults>
</compile_context>

<pallas_src>
import jax
import jax.numpy as jnp
from jax.experimental import pallas as pl
from jax.experimental.pallas import tpu as pltpu


def _round_up(n: int, m: int) -> int:
    return ((n + m - 1) // m) * m


# ----------------------------------------------------------------------------
# Kernel: fused fc1 -> tanh -> fc2 on one batch tile.
# ----------------------------------------------------------------------------
def mlp_kernel(x_ref, w1_ref, b1_ref, w2_ref, b2_ref, o_ref):
    w_dtype = w1_ref.dtype
    x = x_ref[...]
    if x.dtype != w_dtype:           # only when bf16 weights are requested
        x = x.astype(w_dtype)
    h = jnp.dot(x, w1_ref[...], preferred_element_type=jnp.float32)
    h = jnp.tanh(h + b1_ref[...])    # (bm, Hp) + (1, Hp); f32 tanh on the EUP
    if h.dtype != w_dtype:
        h = h.astype(w_dtype)
    o = jnp.dot(h, w2_ref[...], preferred_element_type=jnp.float32)
    o_ref[...] = (o + b2_ref[...]).astype(o_ref.dtype)


# ----------------------------------------------------------------------------
# One-time parameter preparation (hoist out of the per-call forward path).
# ----------------------------------------------------------------------------
def prepare_net_params(w1, b1, w2, b2, *, weights_dtype=jnp.float32):
    """Pad/cast Net parameters once; reuse the result for every forward call.

    w1: (D, H), b1: (H,) or (1, H), w2: (H, O), b2: (O,) or (1, O)
    (i.e. PyTorch nn.Linear weights already transposed to (in, out)).

    Returns (w1p, b1p, w2p, b2p) with H and O zero-padded up to multiples of
    128.  Zero padding keeps the math identical: padded hidden columns are
    tanh(0)=0 and the corresponding fc2 rows are 0.

    Note: weights_dtype=bfloat16 also implies the activations (x, h) are cast
    to bf16 before the MXU, so input mantissa is lost too — only use it when
    D/H are scaled enough that weight DMA/VMEM matters (not at Net's shapes,
    and never worth the extra VPU casts on v5e).
    """
    D, H = w1.shape
    O = w2.shape[1]
    Hp = _round_up(H, 128)
    Op = _round_up(O, 128)
    b1 = jnp.asarray(b1, jnp.float32).reshape(1, H)
    b2 = jnp.asarray(b2, jnp.float32).reshape(1, O)
    w1p = jnp.zeros((D, Hp), jnp.float32).at[:, :H].set(w1).astype(weights_dtype)
    b1p = jnp.zeros((1, Hp), jnp.float32).at[:, :H].set(b1)
    w2p = jnp.zeros((Hp, Op), jnp.float32).at[:H, :O].set(w2).astype(weights_dtype)
    b2p = jnp.zeros((1, Op), jnp.float32).at[:, :O].set(b2)
    return w1p, b1p, w2p, b2p


# ----------------------------------------------------------------------------
# Forward pass using prepared (padded) parameters.
# ----------------------------------------------------------------------------
def net_forward_prepared(x, w1p, b1p, w2p, b2p, *, out_features,
                         out_dtype=jnp.float32, bm=None,
                         single_block_max=1024, return_padded=False):
    """y = fc2(tanh(fc1(x))) with pre-padded params from prepare_net_params.

    x: (B, D) float32.  Returns (B, out_features) in out_dtype
    (or the lane-padded (B, Op) buffer if return_padded=True).
    """
    B, D = x.shape
    Hp = w1p.shape[1]
    Op = w2p.shape[1]

    if B <= single_block_max:
        # Single block: whole problem resident in VMEM, no grid, no copies.
        out = pl.pallas_call(
            mlp_kernel,
            out_shape=jax.ShapeDtypeStruct((B, Op), out_dtype),
            in_specs=[pl.BlockSpec(memory_space=pltpu.MemorySpace.VMEM)] * 5,
            out_specs=pl.BlockSpec(memory_space=pltpu.MemorySpace.VMEM),
        )(x, w1p, b1p, w2p, b2p)
    else:
        # Batch-tiled grid; weights stay fully resident across all steps.
        if bm is None:
            # Target ~2048-row tiles (amortizes the ~0.35 us per-step cost on
            # every generation, incl. v7x's 3.2 TB/s HBM) while keeping >= 2
            # grid steps so both v7x TensorCores get work.
            nsteps = max(2, pl.cdiv(B, 2048))
            bm = _round_up(pl.cdiv(B, nsteps), 8)
        grid = (pl.cdiv(B, bm),)   # ragged final block handled by Pallas
        out = pl.pallas_call(
            mlp_kernel,
            out_shape=jax.ShapeDtypeStruct((B, Op), out_dtype),
            grid=grid,
            in_specs=[
                # x tile; pipeline_mode=pl.Buffered(3) only if a profile shows
                # exposed DMA on these small, descriptor-heavy x copies.
                pl.BlockSpec((bm, D), lambda i: (i, 0)),
                pl.BlockSpec((D, Hp), lambda i: (0, 0)),    # W1 (resident)
                pl.BlockSpec((1, Hp), lambda i: (0, 0)),    # b1
                pl.BlockSpec((Hp, Op), lambda i: (0, 0)),   # W2 (resident)
                pl.BlockSpec((1, Op), lambda i: (0, 0)),    # b2
            ],
            out_specs=pl.BlockSpec((bm, Op), lambda i: (i, 0)),
            compiler_params=pltpu.CompilerParams(
                dimension_semantics=("parallel",),  # megacore / v7x 2-TC
            ),
        )(x, w1p, b1p, w2p, b2p)

    if return_padded:
        return out                     # caller consumes [:, :out_features]
    return out[:, :out_features]


# Convenience one-shot wrapper (prep + forward); prefer calling
# prepare_net_params once and reusing it in steady state.
def net_forward(x, w1, b1, w2, b2, **kwargs):
    params = prepare_net_params(
        w1, b1, w2, b2, weights_dtype=kwargs.pop("weights_dtype", jnp.float32))
    return net_forward_prepared(x, *params, out_features=w2.shape[1], **kwargs)


def reference_forward(x, w1, b1, w2, b2):
    return jnp.tanh(x @ w1 + b1.reshape(1, -1)) @ w2 + b2.reshape(1, -1)


if __name__ == "__main__":
    # Net(inputLayer=32): fc1 32 -> 100, fc2 100 -> 2; small batch of 8.
    B, D, H, O = 8, 32, 100, 2

    key = jax.random.PRNGKey(0)
    kx, kw1, kb1, kw2, kb2 = jax.random.split(key, 5)

    x = jax.random.normal(kx, (B, D), dtype=jnp.float32)

    # Deterministic PyTorch-like uniform init; weights stored as (in, out).
    lim1 = 1.0 / jnp.sqrt(D)
    w1 = jax.random.uniform(kw1, (D, H), minval=-lim1, maxval=lim1, dtype=jnp.float32)
    b1 = jax.random.uniform(kb1, (H,), minval=-lim1, maxval=lim1, dtype=jnp.float32)
    lim2 = 1.0 / jnp.sqrt(H)
    w2 = jax.random.uniform(kw2, (H, O), minval=-lim2, maxval=lim2, dtype=jnp.float32)
    b2 = jax.random.uniform(kb2, (O,), minval=-lim2, maxval=lim2, dtype=jnp.float32)

    # One-time parameter preparation (hoisted out of the forward path).
    params = prepare_net_params(w1, b1, w2, b2)
    params = jax.block_until_ready(params)

    fwd = jax.jit(
        net_forward_prepared,
        static_argnames=("out_features", "out_dtype", "bm",
                         "single_block_max", "return_padded"))

    # 1) Small-batch, single-block (no grid), f32 path — exact semantics.
    ref = reference_forward(x, w1, b1, w2, b2)
    out = jax.block_until_ready(fwd(x, *params, out_features=O))
    assert out.shape == (B, O)
    assert jnp.allclose(out, ref, atol=1e-5, rtol=1e-5)

    # 2) Gridded, megacore-parallel path with a ragged final block
    #    (tile forced small here purely to exercise that path at test scale).
    B2 = 500
    x2 = jax.random.normal(jax.random.PRNGKey(1), (B2, D), dtype=jnp.float32)
    ref2 = reference_forward(x2, w1, b1, w2, b2)
    out2 = jax.block_until_ready(
        fwd(x2, *params, out_features=O, bm=256, single_block_max=128))
    assert out2.shape == (B2, O)
    assert jnp.allclose(out2, ref2, atol=1e-5, rtol=1e-5)

    # TODO(synk): Net.predict (softmax + argmax loop) is host-side logic, not
    # part of forward(); implement in plain JAX if needed.
    print("KERNEL_OK")
</pallas_src>

<mosaic_0001>
module attributes {stable_mosaic.version = 11 : i64} {
  func.func @mlp_kernel(%arg0: memref<8x32xf32, #tpu.memory_space<vmem>>, %arg1: memref<32x128xf32, #tpu.memory_space<vmem>>, %arg2: memref<1x128xf32, #tpu.memory_space<vmem>>, %arg3: memref<128x128xf32, #tpu.memory_space<vmem>>, %arg4: memref<1x128xf32, #tpu.memory_space<vmem>>, %arg5: memref<8x128xf32, #tpu.memory_space<vmem>>) attributes {dimension_semantics = [], scalar_prefetch = 0 : i64, scratch_operands = 0 : i64, tpu.core_type = #tpu.core_type<tc>} {
    %c0 = arith.constant 0 : index
    %c0_0 = arith.constant 0 : index
    %0 = vector.load %arg0[%c0, %c0_0] : memref<8x32xf32, #tpu.memory_space<vmem>>, vector<8x32xf32>
    %c0_1 = arith.constant 0 : index
    %c0_2 = arith.constant 0 : index
    %1 = vector.load %arg1[%c0_1, %c0_2] : memref<32x128xf32, #tpu.memory_space<vmem>>, vector<32x128xf32>
    %cst = arith.constant dense<0.000000e+00> : vector<8x128xf32>
    %2 = tpu.matmul %0, %1, %cst {dimension_numbers = #tpu.dot_dimension_numbers<[1], [0], [0], [1], [0, 0, 1, 1], [], []>} : vector<8x32xf32>, vector<32x128xf32>, vector<8x128xf32> -> vector<8x128xf32>
    %c0_3 = arith.constant 0 : index
    %c0_4 = arith.constant 0 : index
    %3 = vector.load %arg2[%c0_3, %c0_4] : memref<1x128xf32, #tpu.memory_space<vmem>>, vector<1x128xf32>
    %4 = vector.broadcast %3 : vector<1x128xf32> to vector<8x128xf32>
    %5 = arith.addf %2, %4 : vector<8x128xf32>
    %6 = math.tanh %5 : vector<8x128xf32>
    %c0_5 = arith.constant 0 : index
    %c0_6 = arith.constant 0 : index
    %7 = vector.load %arg3[%c0_5, %c0_6] : memref<128x128xf32, #tpu.memory_space<vmem>>, vector<128x128xf32>
    %cst_7 = arith.constant dense<0.000000e+00> : vector<8x128xf32>
    %8 = tpu.matmul %6, %7, %cst_7 {dimension_numbers = #tpu.dot_dimension_numbers<[1], [0], [0], [1], [0, 0, 1, 1], [], []>} : vector<8x128xf32>, vector<128x128xf32>, vector<8x128xf32> -> vector<8x128xf32>
    %c0_8 = arith.constant 0 : index
    %c0_9 = arith.constant 0 : index
    %9 = vector.load %arg4[%c0_8, %c0_9] : memref<1x128xf32, #tpu.memory_space<vmem>>, vector<1x128xf32>
    %10 = vector.broadcast %9 : vector<1x128xf32> to vector<8x128xf32>
    %11 = arith.addf %8, %10 : vector<8x128xf32>
    %c0_10 = arith.constant 0 : index
    %c0_11 = arith.constant 0 : index
    %12 = vector.load %arg5[%c0_10, %c0_11] : memref<8x128xf32, #tpu.memory_space<vmem>>, vector<8x128xf32>
    tpu.vector_store %arg5[%c0_10, %c0_11], %11 {strides = array<i32>} : memref<8x128xf32, #tpu.memory_space<vmem>>, vector<8x128xf32>,
    return
  }
}

</mosaic_0001>

<bundles_post_ra>
// kernel: net_forward_prepared.1
= control target key start
LH: loop header
LB: loop body
LE: loop exit
PB: predicated region body
PF: predicated region fallthrough
CT: control target
= control target key end

     0   :  { %10 = vsyncpa [#allocation3], 0  ;;  %s516_s0 = inlined_call_operand.hbm [shape: f32[8,32], index: 0, kind: input, shape index: {}]   ;;  %s517_s1 = inlined_call_operand.hbm [shape: f32[32,128], index: 1, kind: input, shape index: {}]   ;;  %s518_s2 = inlined_call_operand.vmem [shape: f32[1,128], index: 2, kind: input, shape index: {}]   ;;  %s519_s3 = inlined_call_operand.hbm [shape: f32[128,128], index: 3, kind: input, shape index: {}]   ;;  %s520_s4 = inlined_call_operand.vmem [shape: f32[1,128], index: 4, kind: input, shape index: {}]   ;;  %s521_s5 = inlined_call_operand.vmem [shape: f32[8,128], index: 5, kind: output, shape index: {}]  }
   0x1   :  { %11 = vsyncpa [#allocation5], 0  ;;  %s427_s18 = smov [#allocation4]   ;;  %s357_s22 = scalar_lea.hbm %s517_s1, 512 }
   0x2   :  { %s27_s19 = sshll.u32 %s427_s18, 4  ;;  %p358_p0 = scmp.ne.s32.totalorder %s517_s1, %s357_s22  ;;  %s28_s19 = int_to_ptr.vmem [resolvable:$true] %s27_s19 }
   0x3   :  { %p361_p1 = scmp.lt.u32.totalorder %s357_s22, %s517_s1 }
   0x5   :  { %p363_p2 = pnand %p361_p1, %p358_p0 }
   0x7   :  { %366 = shalt.err (!%p363_p2)
}
   0x8   :  { %s367_s27 = scalar_lea.vmem %s28_s19, 512  ;;  %p372_p4 = scmp.lt.s32.totalorder %s28_s19, %s28_s19 }
   0x9   :  { %p368_p3 = scmp.ne.s32.totalorder %s28_s19, %s367_s27  ;;  %p373_p5 = scmp.lt.s32.totalorder %s367_s27, %s367_s27 }
   0xb   :  { %p374_p6 = por %p373_p5, %p372_p4 }
   0xd   :  { %p375_p7 = pnand %p374_p6, %p368_p3 }
   0xf   :  { %378 = shalt.err (!%p375_p7)
}
  0x10   :  { %s428_s28 = smov 128   ;;  %s429_s29 = smov 8  }
  0x11   :  { %33 = dma.hbm_to_vmem [thread:$0]  %s517_s1, 512, %s28_s19, [#allocation5], %s428_s28, %s428_s28, %s429_s29  }
  0x12   :  { %s430_s7 = smov [#allocation2]   ;;  %s431_s9 = smov [#allocation6]  }
  0x13   :  { %s18_s8 = sshll.u32 %s430_s7, 4  ;;  %s41_s10 = sshll.u32 %s431_s9, 4  ;;  %s19_s8 = int_to_ptr.vmem [resolvable:$true] %s18_s8  ;;  %s42_s10 = int_to_ptr.vmem [resolvable:$true] %s41_s10 }
  0x14   :  { %s379_s13 = scalar_lea.hbm %s516_s0, 128 }
  0x15   :  { %p380_p8 = scmp.ne.s32.totalorder %s516_s0, %s379_s13  ;;  %p383_p9 = scmp.lt.u32.totalorder %s379_s13, %s516_s0 }
  0x17   :  { %p385_p10 = pnand %p383_p9, %p380_p8 }
  0x19   :  { %388 = shalt.err (!%p385_p10)
}
  0x1a   :  { %s389_s1 = scalar_lea.vmem %s19_s8, 128  ;;  %p394_p12 = scmp.lt.s32.totalorder %s19_s8, %s19_s8 }
  0x1b   :  { %p390_p11 = scmp.ne.s32.totalorder %s19_s8, %s389_s1  ;;  %p395_p13 = scmp.lt.s32.totalorder %s389_s1, %s389_s1 }
  0x1d   :  { %p396_p0 = por %p395_p13, %p394_p12 }
  0x1f   :  { %p397_p1 = pnand %p396_p0, %p390_p11 }
  0x21   :  { %400 = shalt.err (!%p397_p1)
}
  0x22   :  { %21 = dma.hbm_to_vmem [thread:$0]  %s516_s0, 128, %s19_s8, [#allocation3]  }
  0x23   :  { %s401_s22 = scalar_lea.hbm %s519_s3, 2048 }
  0x24   :  { %p402_p2 = scmp.ne.s32.totalorder %s519_s3, %s401_s22  ;;  %p405_p3 = scmp.lt.u32.totalorder %s401_s22, %s519_s3 }
  0x26   :  { %p407_p4 = pnand %p405_p3, %p402_p2 }
  0x28   :  { %410 = shalt.err (!%p407_p4)
}
  0x29   :  { %s411_s27 = scalar_lea.vmem %s42_s10, 2048  ;;  %p416_p6 = scmp.lt.s32.totalorder %s42_s10, %s42_s10 }
  0x2a   :  { %p412_p5 = scmp.ne.s32.totalorder %s42_s10, %s411_s27  ;;  %p417_p7 = scmp.lt.s32.totalorder %s411_s27, %s411_s27 }
  0x2c   :  { %p418_p8 = por %p417_p7, %p416_p6 }
  0x2e   :  { %p419_p9 = pnand %p418_p8, %p412_p5 }
  0x30   :  { %422 = shalt.err (!%p419_p9)
}
  0x31   :  { %47 = dma.hbm_to_vmem [thread:$0]  %s519_s3, 2048, %s42_s10, [#allocation5], %s428_s28, %s428_s28, %s429_s29  }
  0x32   :  { %423 = dma.done.wait [#allocation3], 128  }
  0x33   :  { %424 = vsyncadd [#allocation3], 4294967168 }
  0x34   :  { %425 = dma.done.wait [#allocation5], 2560  }
  0x35   :  { %426 = vsyncadd [#allocation5], 4294964736  ;;  %v432_v0 = vmov 0.0|0.0   ;;  %vm433_vm0 = vmmov 0   ;;  %v434_v1 = vmov 0.0   ;;  %v60_v2 = vld [vmem:[#allocation4] sm:$0xff] }
  0x36   :  { %317 = vmatprep.subr.bf16.mxu0 %v432_v0  ;;  %279 = vmatprep.mubr.msk.f32.mxu0 %vm433_vm0, %v434_v1  ;;  %v61_v3 = vld [vmem:[#allocation4 + $0x8] sm:$0xff]  ;;  %v62_v4 = vld [vmem:[#allocation4 + $0x10] sm:$0xff]  ;;  %v63_v6 = vld [vmem:[#allocation4 + $0x18] sm:$0xff]  ;;  %vm71_vm1 = vcmask 261120  }
  0x37   :  { %323 = vmatprep.subr.bf16.mxu1 %v432_v0  ;;  %314 = vmatprep.mubr.msk.f32.mxu1 %vm433_vm0, %v434_v1  ;;  %v318_v5 = vpack.c.bf16 %v61_v3, %v60_v2  ;;  %v146_v7 = vld [vmem:[#allocation6] sm:$0xff]  ;;  %v147_v8 = vld [vmem:[#allocation6 + $0x8] sm:$0xff]  ;;  %v148_v9 = vld [vmem:[#allocation6 + $0x10] sm:$0xff]  ;;  %v321_v11 = vpack.c.bf16 %v63_v6, %v62_v4 }
  0x38   :  { %v149_v10 = vld [vmem:[#allocation6 + $0x18] sm:$0xff]  ;;  %v324_v12 = vpack.c.bf16 %v147_v8, %v146_v7  ;;  %v150_v14 = vld [vmem:[#allocation6 + $0x20] sm:$0xff]  ;;  %v151_v15 = vld [vmem:[#allocation6 + $0x28] sm:$0xff] }
  0x39   :  { %319 = vmatpush3.bf16.msra.mxu0 %v318_v5  ;;  %v327_v13 = vpack.c.bf16 %v149_v10, %v148_v9  ;;  %v59_v16 = vld [vmem:[#allocation2] sm:$0xff]  ;;  %v330_v17 = vpack.c.bf16 %v151_v15, %v150_v14  ;;  %v152_v18 = vld [vmem:[#allocation6 + $0x30] sm:$0xff]  ;;  %v154_v21 = vld [vmem:[#allocation6 + $0x40] sm:$0xff] }
  0x3a   :  { %320 = vmatprep.subr.bf16.mxu0 %v432_v0  ;;  %325 = vmatpush3.bf16.msra.mxu1 %v324_v12  ;;  %v153_v19 = vld [vmem:[#allocation6 + $0x38] sm:$0xff]  ;;  %v155_v22 = vld [vmem:[#allocation6 + $0x48] sm:$0xff]  ;;  %v156_v24 = vld [vmem:[#allocation6 + $0x50] sm:$0xff] }
  0x3b   :  { %326 = vmatprep.subr.bf16.mxu1 %v432_v0  ;;  %v333_v20 = vpack.c.bf16 %v153_v19, %v152_v18  ;;  %v336_v23 = vpack.c.bf16 %v155_v22, %v154_v21  ;;  %v157_v25 = vld [vmem:[#allocation6 + $0x58] sm:$0xff]  ;;  %v158_v27 = vld [vmem:[#allocation6 + $0x60] sm:$0xff]  ;;  %v159_v28 = vld [vmem:[#allocation6 + $0x68] sm:$0xff] }
  0x3c   :  { %v339_v26 = vpack.c.bf16 %v157_v25, %v156_v24  ;;  %v342_v29 = vpack.c.bf16 %v159_v28, %v158_v27  ;;  %v160_v30 = vld [vmem:[#allocation6 + $0x70] sm:$0xff]  ;;  %v161_v31 = vld [vmem:[#allocation6 + $0x78] sm:$0xff] }
  0x3d   :  { %322 = vmatpush3.bf16.msra.mxu0 %v321_v11  ;;  %v345_v32 = vpack.c.bf16 %v161_v31, %v160_v30  ;;  %v246_v33 = vld [vmem:[%s518_s2] ss:$0 sm:$0xff] }
  0x3e   :  { %328 = vmatpush3.bf16.msra.mxu1 %v327_v13  ;;  %v248_v38 = vld [vmem:[%s520_s4] ss:$0 sm:$0xff] }
  0x3f   :  { %329 = vmatprep.subr.bf16.mxu1 %v432_v0 }
  0x40   :  { %280 = vmatmul.mubr.msk.f32.vlgmr.msra.gmra.mrb[0].mxu0 %vm71_vm1, %v59_v16 }
  0x42   :  { %331 = vmatpush3.bf16.msra.mxu1 %v330_v17 }
  0x43   :  { %332 = vmatprep.subr.bf16.mxu1 %v432_v0 }
  0x46   :  { %334 = vmatpush3.bf16.msra.mxu1 %v333_v20 }
  0x47   :  { %335 = vmatprep.subr.bf16.mxu1 %v432_v0 }
  0x4a   :  { %337 = vmatpush3.bf16.msra.mxu1 %v336_v23 }
  0x4b   :  { %338 = vmatprep.subr.bf16.mxu1 %v432_v0 }
  0x4e   :  { %340 = vmatpush3.bf16.msra.mxu1 %v339_v26 }
  0x4f   :  { %341 = vmatprep.subr.bf16.mxu1 %v432_v0 }
  0x52   :  { %343 = vmatpush3.bf16.msra.mxu1 %v342_v29 }
  0x53   :  { %344 = vmatprep.subr.bf16.mxu1 %v432_v0 }
  0x56   :  { %346 = vmatpush3.bf16.msra.mxu1 %v345_v32 }
 0x113   :  { %v141_v34 = vpop.f32.mrb[0].mxu0 }
 0x114   :  { %v142_v35 = vadd.f32 %v246_v33, %v141_v34  ;;  %v281_v36 = vpop.f32.mrb[1].mxu0 }
 0x116   :  { %355 = vtanh.f32 %v142_v35 }
 0x120   :  { %v356_v37 = vpop.eup %355 }
 0x121   :  { %315 = vmatmul.mubr.f32.vlgmr.msra.gmra.mrb[0].mxu1 %v356_v37 }
 0x1f4   :  { %v235_v39 = vpop.f32.mrb[0].mxu1 }
 0x1f5   :  { %v236_v40 = vadd.f32 %v248_v38, %v235_v39  ;;  %v316_v41 = vpop.f32.mrb[1].mxu1 }
 0x1f7   :  { %239 = vst [vmem:[%s521_s5] sm:$0xff] %v236_v40 }
 0x1f8   :  { %244 = vsyncpa [#allocation3], 1 }
 0x1f9   :  { %245 = vsyncpa [#allocation5], 1 }

</bundles_post_ra>
